<compile_context>
chip_gen: v5e
topology: v5e:2x2
jax: 0.10.0
libtpu: 0.0.40
codegen_flags: <defaults>
</compile_context>

<pallas_src>
import functools

import jax
import jax.numpy as jnp
from jax import lax
from jax.experimental import pallas as pl
from jax.experimental.pallas import tpu as pltpu


def _round_up(x: int, m: int) -> int:
    return (x + m - 1) // m * m


def _qfunc_mlp_kernel(obs_ref, act_ref, w1o_ref, w1a_ref, b1_ref,
                      w2_ref, b2_ref, w3_ref, b3_ref, out_ref,
                      *, chunk: int, n_chunks: int, compute_dtype):
    """Fused 3-layer MLP Q(s, a), batch-in-lanes.

    obs_ref : (tile_b, obs_dim)   batch-tiled observations (natural layout)
    act_ref : (tile_b, act_dim)   batch-tiled actions
    w1o_ref : (h1, obs_dim)       layer-1 weight, obs columns (PyTorch (out,in))
    w1a_ref : (h1, act_dim)       layer-1 weight, act columns
    b1_ref  : (h1, 1)
    w2_ref  : (h2, h1)
    b2_ref  : (h2, 1)
    w3_ref  : (1, h2)
    b3_ref  : (1, 1)
    out_ref : (1, tile_b)         lane-dense Q row
    """
    # Contract the last (feature) dim of both operands: (h, d) x (b, d) -> (h, b).
    dn = (((1,), (1,)), ((), ()))
    for c in range(n_chunks):                      # static trip count (<= 4)
        lo, hi = c * chunk, (c + 1) * chunk
        obs_c = obs_ref[lo:hi, :].astype(compute_dtype)     # (chunk, obs_dim)
        act_c = act_ref[lo:hi, :].astype(compute_dtype)     # (chunk, act_dim)

        # Layer 1 (fused obs/act concat), batch ends up on lanes: (h1, chunk).
        h = (lax.dot_general(w1o_ref[...], obs_c, dn,
                             preferred_element_type=jnp.float32)
             + lax.dot_general(w1a_ref[...], act_c, dn,
                               preferred_element_type=jnp.float32)
             + b1_ref[...])
        h = jnp.maximum(h, 0.0)

        # Layer 2: (h2, h1) @ (h1, chunk) -> (h2, chunk).
        h = jnp.dot(w2_ref[...], h.astype(compute_dtype),
                    preferred_element_type=jnp.float32) + b2_ref[...]
        h = jnp.maximum(h, 0.0)

        # Output layer: (1, h2) @ (h2, chunk) -> (1, chunk).  The MXU produces
        # the lane-dense row directly; no sublane->lane relayout needed.
        q = jnp.dot(w3_ref[...], h.astype(compute_dtype),
                    preferred_element_type=jnp.float32) + b3_ref[...]
        out_ref[:, lo:hi] = q.astype(out_ref.dtype)


def qfunc_critic_forward(obs, act, params, *,
                         compute_dtype=jnp.bfloat16, max_tile_b: int = 2048):
    """Q(s, a) forward pass. Returns shape (B,)."""
    w1o, w1a, b1, w2, b2, w3, b3 = params
    obs = obs.astype(jnp.float32)
    act = act.astype(jnp.float32)

    # MXU operands in compute_dtype (bf16 native path on v6e/v7x); biases,
    # ReLU and accumulation stay f32.  Weight casts are tiny / one-off.
    w1o_c = w1o.astype(compute_dtype)
    w1a_c = w1a.astype(compute_dtype)
    w2_c = w2.astype(compute_dtype)
    w3_c = w3.astype(compute_dtype)

    B, obs_dim = obs.shape
    act_dim = act.shape[1]
    h1 = w1o.shape[0]
    h2 = w2.shape[0]

    # --- Batch tiling -------------------------------------------------------
    b8 = _round_up(B, 8)
    if b8 <= 512:
        # Single small tile (sub-128 lane output store is masked but correct).
        tile_b = b8
        chunk = b8
    else:
        # Lane-dense tiles, multiple of the 512-lane in-kernel chunk; keep
        # >= 2 tiles when possible so both v7x TensorCores get work.
        tile_b = min(max_tile_b, _round_up(pl.cdiv(b8, 2), 512))
        chunk = 512
    b_pad = _round_up(B, tile_b)
    if b_pad != B:
        obs = jnp.pad(obs, ((0, b_pad - B), (0, 0)))
        act = jnp.pad(act, ((0, b_pad - B), (0, 0)))
    num_tiles = b_pad // tile_b
    n_chunks = tile_b // chunk

    flops = 2 * b_pad * (obs_dim * h1 + act_dim * h1 + h1 * h2 + h2)
    w_item = jnp.dtype(compute_dtype).itemsize
    bytes_accessed = int(4 * b_pad * (obs_dim + act_dim + 1)
                         + w_item * (obs_dim * h1 + act_dim * h1 + h1 * h2 + h2)
                         + 4 * (h1 + h2 + 1))

    kernel = functools.partial(_qfunc_mlp_kernel, chunk=chunk,
                               n_chunks=n_chunks, compute_dtype=compute_dtype)

    q_row = pl.pallas_call(
        kernel,
        out_shape=jax.ShapeDtypeStruct((1, b_pad), jnp.float32),
        grid=(num_tiles,),
        in_specs=[
            # Batch-tiled activations (natural (B, dim) layout).
            pl.BlockSpec((tile_b, obs_dim), lambda i: (i, 0)),
            pl.BlockSpec((tile_b, act_dim), lambda i: (i, 0)),
            # Weights / biases: constant index_map -> DMA'd once, VMEM-resident.
            pl.BlockSpec(w1o_c.shape, lambda i: (0, 0)),
            pl.BlockSpec(w1a_c.shape, lambda i: (0, 0)),
            pl.BlockSpec(b1.shape, lambda i: (0, 0)),
            pl.BlockSpec(w2_c.shape, lambda i: (0, 0)),
            pl.BlockSpec(b2.shape, lambda i: (0, 0)),
            pl.BlockSpec(w3_c.shape, lambda i: (0, 0)),
            pl.BlockSpec(b3.shape, lambda i: (0, 0)),
        ],
        # Lane-dense output row: last dim is tile_b (multiple of 128 on the
        # large-batch path, or the full padded batch on the small path).
        out_specs=pl.BlockSpec((1, tile_b), lambda i: (0, i)),
        compiler_params=pltpu.CompilerParams(
            dimension_semantics=("parallel",)),
        cost_estimate=pl.CostEstimate(
            flops=flops, transcendentals=0, bytes_accessed=bytes_accessed),
    )(obs, act, w1o_c, w1a_c, b1, w2_c, b2, w3_c, b3)

    # torch.squeeze(q, -1); drop padded rows.
    return q_row[0, :B]


def init_params(key, obs_dim, act_dim, hidden_sizes):
    """Deterministic synthetic init, PyTorch nn.Linear (out, in) layout."""
    h1, h2 = hidden_sizes
    keys = jax.random.split(key, 6)

    def linear(kw, kb, fan_in, fan_out):
        bound = 1.0 / (fan_in ** 0.5)
        w = jax.random.uniform(kw, (fan_out, fan_in),
                               minval=-bound, maxval=bound, dtype=jnp.float32)
        b = jax.random.uniform(kb, (fan_out, 1),
                               minval=-bound, maxval=bound, dtype=jnp.float32)
        return w, b

    w1, b1 = linear(keys[0], keys[1], obs_dim + act_dim, h1)   # (h1, obs+act)
    w2, b2 = linear(keys[2], keys[3], h1, h2)                  # (h2, h1)
    w3, b3 = linear(keys[4], keys[5], h2, 1)                   # (1, h2), (1,1)

    # Split W1 by input source so the obs/act concat stays fused in the kernel.
    w1_obs, w1_act = w1[:, :obs_dim], w1[:, obs_dim:]
    return (w1_obs, w1_act, b1, w2, b2, w3, b3)


def reference_forward(obs, act, params):
    """Pure-JAX reference for sanity check."""
    w1o, w1a, b1, w2, b2, w3, b3 = params
    h = jnp.maximum(obs @ w1o.T + act @ w1a.T + b1.T, 0.0)
    h = jnp.maximum(h @ w2.T + b2.T, 0.0)
    q = h @ w3.T + b3
    return jnp.squeeze(q, axis=-1)


if __name__ == "__main__":
    B = 8
    obs_dim = 12
    act_dim = 4
    hidden_sizes = (32, 32)

    key = jax.random.PRNGKey(0)
    k_obs, k_act, k_params = jax.random.split(key, 3)

    obs = jax.random.normal(k_obs, (B, obs_dim), dtype=jnp.float32)
    act = jax.random.normal(k_act, (B, act_dim), dtype=jnp.float32)
    params = init_params(k_params, obs_dim, act_dim, hidden_sizes)
    q_ref = reference_forward(obs, act, params)

    # f32 MXU-operand path: tight check against the pure-JAX reference.
    q_f32 = jax.block_until_ready(
        qfunc_critic_forward(obs, act, params, compute_dtype=jnp.float32))
    assert q_f32.shape == (B,), q_f32.shape
    assert jnp.allclose(q_f32, q_ref, atol=1e-4, rtol=1e-4), (q_f32, q_ref)

    # Default bf16 MXU-operand path (native on v6e/v7x): looser tolerance.
    q_bf16 = jax.block_until_ready(qfunc_critic_forward(obs, act, params))
    assert q_bf16.shape == (B,), q_bf16.shape
    assert jnp.allclose(q_bf16, q_ref, atol=3e-2, rtol=3e-2), (q_bf16, q_ref)

    # Large batch: multi-tile grid, in-kernel chunk loop, padded-tail path.
    B2 = 2000
    k_obs2, k_act2 = jax.random.split(jax.random.PRNGKey(1))
    obs2 = jax.random.normal(k_obs2, (B2, obs_dim), dtype=jnp.float32)
    act2 = jax.random.normal(k_act2, (B2, act_dim), dtype=jnp.float32)
    q2 = jax.block_until_ready(
        qfunc_critic_forward(obs2, act2, params, compute_dtype=jnp.float32))
    q2_ref = reference_forward(obs2, act2, params)
    assert q2.shape == (B2,), q2.shape
    assert jnp.allclose(q2, q2_ref, atol=1e-4, rtol=1e-4)

    print("KERNEL_OK")
</pallas_src>

<mosaic_0001>
module attributes {stable_mosaic.version = 11 : i64} {
  func.func @_qfunc_mlp_kernel(%arg0: i32, %arg1: memref<8x12xf32, #tpu.memory_space<vmem>>, %arg2: memref<8x4xf32, #tpu.memory_space<vmem>>, %arg3: memref<32x12xf32, #tpu.memory_space<vmem>>, %arg4: memref<32x4xf32, #tpu.memory_space<vmem>>, %arg5: memref<32x1xf32, #tpu.memory_space<vmem>>, %arg6: memref<32x32xf32, #tpu.memory_space<vmem>>, %arg7: memref<32x1xf32, #tpu.memory_space<vmem>>, %arg8: memref<1x32xf32, #tpu.memory_space<vmem>>, %arg9: memref<1x1xf32, #tpu.memory_space<vmem>>, %arg10: memref<1x8xf32, #tpu.memory_space<vmem>>) attributes {dimension_semantics = [#tpu.dimension_semantics<parallel>], iteration_bounds = array<i64: 1>, scalar_prefetch = 0 : i64, scratch_operands = 0 : i64, tpu.core_type = #tpu.core_type<tc>, window_params = [{transform_indices = @transform_0, window_bounds = array<i64: 8, 12>}, {transform_indices = @transform_1, window_bounds = array<i64: 8, 4>}, {pipeline_mode = #tpu.pipeline_mode<synchronous>, transform_indices = @transform_2, window_bounds = array<i64: 32, 12>}, {pipeline_mode = #tpu.pipeline_mode<synchronous>, transform_indices = @transform_3, window_bounds = array<i64: 32, 4>}, {pipeline_mode = #tpu.pipeline_mode<synchronous>, transform_indices = @transform_4, window_bounds = array<i64: 32, 1>}, {pipeline_mode = #tpu.pipeline_mode<synchronous>, transform_indices = @transform_5, window_bounds = array<i64: 32, 32>}, {pipeline_mode = #tpu.pipeline_mode<synchronous>, transform_indices = @transform_6, window_bounds = array<i64: 32, 1>}, {pipeline_mode = #tpu.pipeline_mode<synchronous>, transform_indices = @transform_7, window_bounds = array<i64: 1, 32>}, {pipeline_mode = #tpu.pipeline_mode<synchronous>, transform_indices = @transform_8, window_bounds = array<i64: 1, 1>}, {transform_indices = @transform_9, window_bounds = array<i64: 1, 8>}]} {
    %c0 = arith.constant 0 : index
    %c0_0 = arith.constant 0 : index
    %0 = vector.load %arg1[%c0, %c0_0] : memref<8x12xf32, #tpu.memory_space<vmem>>, vector<8x12xf32>
    %c0_1 = arith.constant 0 : index
    %c0_2 = arith.constant 0 : index
    %1 = vector.load %arg2[%c0_1, %c0_2] : memref<8x4xf32, #tpu.memory_space<vmem>>, vector<8x4xf32>
    %c0_3 = arith.constant 0 : index
    %c0_4 = arith.constant 0 : index
    %2 = vector.load %arg3[%c0_3, %c0_4] : memref<32x12xf32, #tpu.memory_space<vmem>>, vector<32x12xf32>
    %cst = arith.constant dense<0.000000e+00> : vector<32x8xf32>
    %3 = tpu.matmul %2, %0, %cst {dimension_numbers = #tpu.dot_dimension_numbers<[1], [1], [0], [0], [0, 0, 1, 0], [], []>} : vector<32x12xf32>, vector<8x12xf32>, vector<32x8xf32> -> vector<32x8xf32>
    %c0_5 = arith.constant 0 : index
    %c0_6 = arith.constant 0 : index
    %4 = vector.load %arg4[%c0_5, %c0_6] : memref<32x4xf32, #tpu.memory_space<vmem>>, vector<32x4xf32>
    %cst_7 = arith.constant dense<0.000000e+00> : vector<32x8xf32>
    %5 = tpu.matmul %4, %1, %cst_7 {dimension_numbers = #tpu.dot_dimension_numbers<[1], [1], [0], [0], [0, 0, 1, 0], [], []>} : vector<32x4xf32>, vector<8x4xf32>, vector<32x8xf32> -> vector<32x8xf32>
    %6 = arith.addf %3, %5 : vector<32x8xf32>
    %c0_8 = arith.constant 0 : index
    %c0_9 = arith.constant 0 : index
    %7 = vector.load %arg5[%c0_8, %c0_9] : memref<32x1xf32, #tpu.memory_space<vmem>>, vector<32x1xf32>
    %8 = vector.broadcast %7 : vector<32x1xf32> to vector<32x8xf32>
    %9 = arith.addf %6, %8 : vector<32x8xf32>
    %cst_10 = arith.constant 0.000000e+00 : f32
    %10 = vector.broadcast %cst_10 : f32 to vector<32x8xf32>
    %11 = arith.maximumf %9, %10 : vector<32x8xf32>
    %c0_11 = arith.constant 0 : index
    %c0_12 = arith.constant 0 : index
    %12 = vector.load %arg6[%c0_11, %c0_12] : memref<32x32xf32, #tpu.memory_space<vmem>>, vector<32x32xf32>
    %cst_13 = arith.constant dense<0.000000e+00> : vector<32x8xf32>
    %13 = tpu.matmul %12, %11, %cst_13 {dimension_numbers = #tpu.dot_dimension_numbers<[1], [0], [0], [1], [0, 0, 1, 1], [], []>} : vector<32x32xf32>, vector<32x8xf32>, vector<32x8xf32> -> vector<32x8xf32>
    %c0_14 = arith.constant 0 : index
    %c0_15 = arith.constant 0 : index
    %14 = vector.load %arg7[%c0_14, %c0_15] : memref<32x1xf32, #tpu.memory_space<vmem>>, vector<32x1xf32>
    %15 = vector.broadcast %14 : vector<32x1xf32> to vector<32x8xf32>
    %16 = arith.addf %13, %15 : vector<32x8xf32>
    %cst_16 = arith.constant 0.000000e+00 : f32
    %17 = vector.broadcast %cst_16 : f32 to vector<32x8xf32>
    %18 = arith.maximumf %16, %17 : vector<32x8xf32>
    %c0_17 = arith.constant 0 : index
    %c0_18 = arith.constant 0 : index
    %19 = vector.load %arg8[%c0_17, %c0_18] : memref<1x32xf32, #tpu.memory_space<vmem>>, vector<1x32xf32>
    %cst_19 = arith.constant dense<0.000000e+00> : vector<1x8xf32>
    %20 = tpu.matmul %19, %18, %cst_19 {dimension_numbers = #tpu.dot_dimension_numbers<[1], [0], [0], [1], [0, 0, 1, 1], [], []>} : vector<1x32xf32>, vector<32x8xf32>, vector<1x8xf32> -> vector<1x8xf32>
    %c0_20 = arith.constant 0 : index
    %c0_21 = arith.constant 0 : index
    %21 = vector.load %arg9[%c0_20, %c0_21] : memref<1x1xf32, #tpu.memory_space<vmem>>, vector<1x1xf32>
    %22 = vector.broadcast %21 : vector<1x1xf32> to vector<1x8xf32>
    %23 = arith.addf %20, %22 : vector<1x8xf32>
    %c0_22 = arith.constant 0 : index
    %c0_23 = arith.constant 0 : index
    %24 = vector.load %arg10[%c0_22, %c0_23] : memref<1x8xf32, #tpu.memory_space<vmem>>, vector<1x8xf32>
    tpu.vector_store %arg10[%c0_22, %c0_23], %23 {strides = array<i32>} : memref<1x8xf32, #tpu.memory_space<vmem>>, vector<1x8xf32>,
    return
  }
  func.func @transform_0(%arg0: i32) -> (i32, i32) {
    %c0_i32 = arith.constant 0 : i32
    %c0_i32_0 = arith.constant 0 : i32
    return %arg0, %c0_i32 : i32, i32
  }
  func.func @transform_1(%arg0: i32) -> (i32, i32) {
    %c0_i32 = arith.constant 0 : i32
    %c0_i32_0 = arith.constant 0 : i32
    return %arg0, %c0_i32 : i32, i32
  }
  func.func @transform_2(%arg0: i32) -> (i32, i32) {
    %c0_i32 = arith.constant 0 : i32
    %c0_i32_0 = arith.constant 0 : i32
    %c0_i32_1 = arith.constant 0 : i32
    return %c0_i32, %c0_i32_0 : i32, i32
  }
  func.func @transform_3(%arg0: i32) -> (i32, i32) {
    %c0_i32 = arith.constant 0 : i32
    %c0_i32_0 = arith.constant 0 : i32
    %c0_i32_1 = arith.constant 0 : i32
    return %c0_i32, %c0_i32_0 : i32, i32
  }
  func.func @transform_4(%arg0: i32) -> (i32, i32) {
    %c0_i32 = arith.constant 0 : i32
    %c0_i32_0 = arith.constant 0 : i32
    %c0_i32_1 = arith.constant 0 : i32
    return %c0_i32, %c0_i32_0 : i32, i32
  }
  func.func @transform_5(%arg0: i32) -> (i32, i32) {
    %c0_i32 = arith.constant 0 : i32
    %c0_i32_0 = arith.constant 0 : i32
    %c0_i32_1 = arith.constant 0 : i32
    return %c0_i32, %c0_i32_0 : i32, i32
  }
  func.func @transform_6(%arg0: i32) -> (i32, i32) {
    %c0_i32 = arith.constant 0 : i32
    %c0_i32_0 = arith.constant 0 : i32
    %c0_i32_1 = arith.constant 0 : i32
    return %c0_i32, %c0_i32_0 : i32, i32
  }
  func.func @transform_7(%arg0: i32) -> (i32, i32) {
    %c0_i32 = arith.constant 0 : i32
    %c0_i32_0 = arith.constant 0 : i32
    %c0_i32_1 = arith.constant 0 : i32
    return %c0_i32, %c0_i32_0 : i32, i32
  }
  func.func @transform_8(%arg0: i32) -> (i32, i32) {
    %c0_i32 = arith.constant 0 : i32
    %c0_i32_0 = arith.constant 0 : i32
    %c0_i32_1 = arith.constant 0 : i32
    return %c0_i32, %c0_i32_0 : i32, i32
  }
  func.func @transform_9(%arg0: i32) -> (i32, i32) {
    %c0_i32 = arith.constant 0 : i32
    %c0_i32_0 = arith.constant 0 : i32
    return %c0_i32, %arg0 : i32, i32
  }
}

</mosaic_0001>

<bundles_post_ra>
// kernel: tpu_custom_call.1
= control target key start
LH: loop header
LB: loop body
LE: loop exit
PB: predicated region body
PF: predicated region fallthrough
CT: control target
= control target key end

     0   :  { %s482_s0 = inlined_call_operand.vmem [shape: f32[8,12], index: 0, kind: input, shape index: {}]   ;;  %s483_s1 = inlined_call_operand.vmem [shape: f32[8,4], index: 1, kind: input, shape index: {}]   ;;  %s484_s2 = inlined_call_operand.vmem [shape: f32[32,12], index: 2, kind: input, shape index: {}]   ;;  %s485_s3 = inlined_call_operand.vmem [shape: f32[32,4], index: 3, kind: input, shape index: {}]   ;;  %s486_s4 = inlined_call_operand.vmem [shape: f32[32,1], index: 4, kind: input, shape index: {}]   ;;  %s487_s5 = inlined_call_operand.vmem [shape: f32[32,32], index: 5, kind: input, shape index: {}]   ;;  %s488_s6 = inlined_call_operand.vmem [shape: f32[32,1], index: 6, kind: input, shape index: {}]   ;;  %s489_s7 = inlined_call_operand.vmem [shape: f32[1,32], index: 7, kind: input, shape index: {}]   ;;  %s490_s8 = inlined_call_operand.<no memory space> [shape: f32[1,1], index: 8, kind: input, shape index: {}]   ;;  %s491_s9 = inlined_call_operand.hbm [shape: f32[1,8], index: 9, kind: output, shape index: {}]  }
   0x1   :  { %v14_v0 = vstv %s490_s8 }
   0x2   :  { %15 = vst [vmem:[#allocation2] sm:$0x1] %v14_v0 }
   0x3   :  { %v36_v1 = vld [vmem:[%s483_s1] sm:$0xff]  ;;  %vm45_vm0 = vcmask 31744   ;;  %vm90_vm1 = vcmask 97280   ;;  %v136_v5 = vld [vmem:[%s486_s4 + $0x8] sm:$0xff]  ;;  %v340_v6 = vmov 0   ;;  %v138_v7 = vld [vmem:[%s486_s4 + $0x18] sm:$0xff] }
   0x4   :  { %v35_v2 = vld [vmem:[%s482_s0] sm:$0xff]  ;;  %290 = vmatpush.xpose.msk.msra.mxu0 %vm45_vm0, %v36_v1  ;;  %312 = vset.pattern.permute.xlu1 %v340_v6 }
   0x5   :  { %295 = vmatpush.xpose.msk.msra.mxu1 %vm90_vm1, %v35_v2  ;;  %v41_v3 = vld [vmem:[%s485_s3] sm:$0xff]  ;;  %311 = vset.pattern.permute.xlu0 %v340_v6 }
   0x6   :  { %v37_v4 = vld [vmem:[%s484_s2] sm:$0xff]  ;;  %146 = vperm.xlu1 %312, %v136_v5   ;;  %156 = vperm.xlu0 %311, %v138_v7  }
   0x7   :  { %291 = vmatmul.msk.f32.vlgmr.msra.gmra.mxu0 %vm45_vm0, %v41_v3  ;;  %313 = vset.pattern.permute.xlu2 %v340_v6 }
   0x8   :  { %296 = vmatmul.msk.f32.vlgmr.msra.gmra.mxu1 %vm90_vm1, %v37_v4 }
   0x9   :  { %16 = vsyncpa [#allocation4], 0  ;;  %v135_v8 = vld [vmem:[%s486_s4] sm:$0xff]  ;;  %v137_v9 = vld [vmem:[%s486_s4 + $0x10] sm:$0xff]  ;;  %vm195_vm2 = vcmask 261120   ;;  %s341_s25 = smov [#allocation3]  }
   0xa   :  { %v42_v10 = vld [vmem:[%s485_s3 + $0x8] sm:$0xff]  ;;  %v171_v13 = vld [vmem:[%s488_s6] sm:$0xff]  ;;  %v43_v14 = vld [vmem:[%s485_s3 + $0x10] sm:$0xff]  ;;  %s279_s26 = sshll.u32 %s341_s25, 4  ;;  %s281_s29 = sshll.u32 %s491_s9, 4  ;;  %vm272_vm3 = vcmask 57344   ;;  %s280_s26 = int_to_ptr.vmem [resolvable:$true] %s279_s26  ;;  %s282_s29 = int_to_ptr.hbm [resolvable:$true] %s281_s29 }
   0xb   :  { %v38_v11 = vld [vmem:[%s484_s2 + $0x8] sm:$0xff]  ;;  %v39_v15 = vld [vmem:[%s484_s2 + $0x10] sm:$0xff]  ;;  %v44_v16 = vld [vmem:[%s485_s3 + $0x18] sm:$0xff] }
   0xc   :  { %v172_v12 = vld [vmem:[%s488_s6 + $0x8] sm:$0xff]  ;;  %v40_v17 = vld [vmem:[%s484_s2 + $0x18] sm:$0xff]  ;;  %v173_v39 = vld [vmem:[%s488_s6 + $0x10] sm:$0xff] }
   0xd   :  { %v174_v26 = vld [vmem:[%s488_s6 + $0x18] sm:$0xff]  ;;  %v167_v44 = vld [vmem:[%s487_s5] sm:$0xff]  ;;  %v168_v47 = vld [vmem:[%s487_s5 + $0x8] sm:$0xff] }
   0xe   :  { %141 = vperm.xlu1 %312, %v135_v8   ;;  %151 = vperm.xlu0 %311, %v137_v9   ;;  %v170_v45 = vld [vmem:[%s487_s5 + $0x18] sm:$0xff]  ;;  %v242_v46 = vld [vmem:[#allocation2] sm:$0x1]  ;;  %v169_v48 = vld [vmem:[%s487_s5 + $0x10] sm:$0xff] }
   0xf   :  { %292 = vmatmul.msk.f32.gmra.mxu0 %vm45_vm0, %v42_v10  ;;  %192 = vperm.xlu2 %313, %v174_v26   ;;  %v241_v1 = vld [vmem:[%s489_s7] sm:$0x1] }
  0x10   :  { %297 = vmatmul.msk.f32.gmra.mxu1 %vm90_vm1, %v38_v11 }
  0x16   :  { %182 = vperm.xlu0 %311, %v172_v12   ;;  %177 = vperm.xlu1 %312, %v171_v13  }
  0x17   :  { %293 = vmatmul.msk.f32.gmra.mxu0 %vm45_vm0, %v43_v14  ;;  %187 = vperm.xlu2 %313, %v173_v39  }
  0x18   :  { %298 = vmatmul.msk.f32.gmra.mxu1 %vm90_vm1, %v39_v15 }
  0x1f   :  { %294 = vmatmul.msk.f32.gmra.mxu0 %vm45_vm0, %v44_v16  ;;  %245 = vperm.xlu2 %313, %v242_v46  }
  0x20   :  { %299 = vmatmul.msk.f32.gmra.mxu1 %vm90_vm1, %v40_v17 }
  0x69   :  { %v193_v49 = vpop.permute.xlu2 %192 }
  0x71   :  { %v188_v56 = vpop.permute.xlu2 %187 }
  0x78   :  { %v157_v22 = vpop.permute.xlu0 %156  ;;  %v147_v25 = vpop.permute.xlu1 %146 }
  0x79   :  { %v246_v2 = vpop.permute.xlu2 %245 }
  0x7a   :  { %v248_v3 = vperm.slane %v246_v2, 0 }
  0x80   :  { %v152_v32 = vpop.permute.xlu0 %151  ;;  %v142_v36 = vpop.permute.xlu1 %141 }
  0x84   :  { %v78_v18 = vpop.f32.mrf.mxu0 }
  0x85   :  { %v123_v19 = vpop.f32.mrf.mxu1 }
  0x86   :  { %v124_v33 = vadd.f32 %v123_v19, %v78_v18 }
  0x88   :  { %v159_v40 = vadd.f32 %v142_v36, %v124_v33  ;;  %v183_v55 = vpop.permute.xlu0 %182  ;;  %v178_v60 = vpop.permute.xlu1 %177 }
  0x8a   :  { %v163_v43 = vmax.f32 %v159_v40, 0.0 }
  0x8c   :  { %v81_v20 = vpop.f32.mrf.mxu0 }
  0x8d   :  { %v126_v21 = vpop.f32.mrf.mxu1 }
  0x8e   :  { %v127_v30 = vadd.f32 %v126_v21, %v81_v20 }
  0x90   :  { %v160_v38 = vadd.f32 %v147_v25, %v127_v30 }
  0x92   :  { %v164_v42 = vmax.f32 %v160_v38, 0.0 }
  0x94   :  { %v84_v23 = vpop.f32.mrf.mxu0 }
  0x95   :  { %v129_v24 = vpop.f32.mrf.mxu1 }
  0x96   :  { %v130_v27 = vadd.f32 %v129_v24, %v84_v23 }
  0x98   :  { %v161_v35 = vadd.f32 %v152_v32, %v130_v27 }
  0x9a   :  { %v165_v41 = vmax.f32 %v161_v35, 0.0 }
  0x9c   :  { %v87_v28 = vpop.f32.mrf.mxu0 }
  0x9d   :  { %v132_v29 = vpop.f32.mrf.mxu1 }
  0x9e   :  { %v133_v31 = vadd.f32 %v132_v29, %v87_v28 }
  0xa0   :  { %v162_v34 = vadd.f32 %v157_v22, %v133_v31 }
  0xa2   :  { %v166_v37 = vmax.f32 %v162_v34, 0.0 }
  0xa4   :  { %220 = vmatpush.msra.mxu2 %v166_v37  ;;  %305 = vmatpush.msra.mxu3 %v166_v37 }
  0xa6   :  { %221 = vmatpush.msra.mxu2 %v165_v41  ;;  %306 = vmatpush.msra.mxu3 %v165_v41 }
  0xa8   :  { %222 = vmatpush.msra.mxu2 %v164_v42  ;;  %307 = vmatpush.msra.mxu3 %v164_v42 }
  0xaa   :  { %223 = vmatpush.msra.mxu2 %v163_v43  ;;  %308 = vmatpush.msra.mxu3 %v163_v43 }
  0xab   :  { %300 = vmatmul.msk.f32.vlgmr.msra.gmra.mxu2 %vm195_vm2, %v167_v44  ;;  %303 = vmatmul.msk.f32.vlgmr.msra.gmra.mxu3 %vm195_vm2, %v170_v45 }
  0xb3   :  { %301 = vmatmul.msk.f32.gmra.mxu2 %vm195_vm2, %v168_v47 }
  0xbb   :  { %302 = vmatmul.msk.f32.gmra.mxu2 %vm195_vm2, %v169_v48 }
 0x12e   :  { %v225_v50 = vpop.f32.mrf.mxu2  ;;  %v234_v51 = vpop.f32.mrf.mxu3 }
 0x12f   :  { %v235_v52 = vadd.f32 %v234_v51, %v193_v49  ;;  %v226_v61 = vadd.f32 %v225_v50, %v178_v60 }
 0x131   :  { %v240_v53 = vmax.f32 %v235_v52, 0.0  ;;  %v237_v0 = vmax.f32 %v226_v61, 0.0 }
 0x133   :  { %264 = vmatpush.msrb.mxu3 %v240_v53 }
 0x136   :  { %v228_v54 = vpop.f32.mrf.mxu2 }
 0x137   :  { %v229_v58 = vadd.f32 %v228_v54, %v183_v55 }
 0x139   :  { %v238_v63 = vmax.f32 %v229_v58, 0.0 }
 0x13e   :  { %v231_v57 = vpop.f32.mrf.mxu2 }
 0x13f   :  { %v232_v59 = vadd.f32 %v231_v57, %v188_v56 }
 0x141   :  { %v239_v62 = vmax.f32 %v232_v59, 0.0 }
 0x143   :  { %265 = vmatpush.msrb.mxu3 %v239_v62 }
 0x145   :  { %266 = vmatpush.msrb.mxu3 %v238_v63 }
 0x147   :  { %267 = vmatpush.msrb.mxu3 %v237_v0 }
 0x148   :  { %304 = vmatmul.msk.f32.vlgmr.msrb.gmra.mxu3 %vm195_vm2, %v241_v1 }
 0x1cb   :  { %v269_v4 = vpop.f32.mrf.mxu3 }
 0x1cc   :  { %v270_v5 = vadd.f32 %v269_v4, %v248_v3 }
 0x1ce   :  { %273 = vst.msk [vmem:[#allocation3] sm:$0x1] %vm272_vm3, %v270_v5 }
 0x1cf   :  { %284 = dma.vmem_to_hbm [thread:$0]  %s280_s26, 16, %s282_s29, [#allocation4]  }
 0x1d0   :  { %338 = dma.done.wait [#allocation4], 16  }
 0x1d1   :  { %339 = vsyncadd [#allocation4], 4294967280 }
 0x1d2   :  { %289 = vsyncpa [#allocation4], 1 }

</bundles_post_ra>
